<compile_context>
chip_gen: v6e
topology: v6e:2x2x1
jax: 0.10.0
libtpu: 0.0.40
codegen_flags: <defaults>
</compile_context>

<pallas_src>
import jax
import jax.numpy as jnp
from jax.experimental import pallas as pl
from jax.experimental.pallas import tpu as pltpu


def _round_up(n: int, m: int) -> int:
    return ((n + m - 1) // m) * m


def mlp_kernel(x_ref, w1_ref, b1_ref, w2_ref, b2_ref, o_ref):
    # x_ref: (tm, Cp)   w1_ref: (Cp, Hp)   b1_ref: (1, Hp)  (f32)
    # w2_ref: (Hp, Cp)  b2_ref: (1, Cp)    o_ref: (tm, Cp)
    # Load biases once per tile (already f32 = accumulator dtype).
    b1 = b1_ref[...]
    b2 = b2_ref[...]

    # First linear: feed the MXU the native dtype (bf16/f32), accumulate in f32.
    h = jnp.dot(x_ref[...], w1_ref[...], preferred_element_type=jnp.float32) + b1

    # GELU, tanh approximation (matches nn.GELU(approximate='tanh')); f32 VPU math,
    # tanh goes to the EUP.  Reuse h*h to trim VALU work.
    c = jnp.float32(0.7978845608028654)  # sqrt(2/pi)
    h2 = h * h
    g = 0.5 * h * (1.0 + jnp.tanh(c * (h + jnp.float32(0.044715) * h2 * h)))

    # Second linear: cast the hidden activation back to the MXU input dtype.
    y = jnp.dot(g.astype(w2_ref.dtype), w2_ref[...],
                preferred_element_type=jnp.float32) + b2

    o_ref[...] = y.astype(o_ref.dtype)


def mlp_pallas(x, w1, b1, w2, b2, *, tm=256, compute_dtype=None):
    """Fused MLP forward.  x: (B, T, C); w1: (C, 4C); b1: (4C,); w2: (4C, C); b2: (C,).

    tm: row tile (default 256 = MXU height on v6e/v7x; multiples of 128 suit v5e).
    compute_dtype: optional matmul input dtype (e.g. jnp.bfloat16 to use the
    native bf16 MXU path with f32 accumulation when params are stored in f32).
    """
    B, T, C = x.shape
    H = w1.shape[1]
    M = B * T

    in_dtype = jnp.dtype(compute_dtype) if compute_dtype is not None else jnp.dtype(x.dtype)
    out_dtype = jnp.dtype(x.dtype)

    # Sublane granularity: 8 rows for 4-byte dtypes, 16 for 2-byte, 32 for 1-byte.
    sublane = max(32 // in_dtype.itemsize, 32 // out_dtype.itemsize)

    # Lane-dense padding: last dims presented to the kernel are multiples of 128
    # (avoids masked partial stores and under-filled vregs).
    Cp = _round_up(C, 128)
    Hp = _round_up(H, 128)

    # Row tile: large enough to keep the MXU fed, never larger than the
    # sublane-rounded row count; padded row count is an exact multiple of tm.
    tm = max(sublane, min(tm, _round_up(M, sublane)))
    tm = _round_up(tm, sublane)
    Mp = _round_up(M, tm)

    # Zero padding keeps the math exact (padded columns/rows contribute 0).
    x2d = jnp.pad(x.reshape(M, C), ((0, Mp - M), (0, Cp - C))).astype(in_dtype)
    w1p = jnp.pad(w1, ((0, Cp - C), (0, Hp - H))).astype(in_dtype)
    w2p = jnp.pad(w2, ((0, Hp - H), (0, Cp - C))).astype(in_dtype)
    b1p = jnp.pad(b1.astype(jnp.float32).reshape(1, H), ((0, 0), (0, Hp - H)))
    b2p = jnp.pad(b2.astype(jnp.float32).reshape(1, C), ((0, 0), (0, Cp - C)))

    # VMEM budget: single-buffered resident weights + biases, double-buffered
    # x/out row tiles, f32 hidden tile; 2x headroom, capped at v7x's 64 MiB.
    # (For very large C where the resident weights no longer fit, tile the hidden
    #  dim with an f32 accumulator instead of keeping both weights resident.)
    est = ((Cp * Hp + Hp * Cp) * in_dtype.itemsize                   # W1 + W2, 1 buffer
           + (Hp + Cp) * 4                                           # biases (f32)
           + 2 * tm * Cp * (in_dtype.itemsize + out_dtype.itemsize)  # x/out, 2-deep
           + tm * Hp * 4)                                            # f32 hidden tile
    vmem_limit = int(min(max(2 * est, 32 * 1024 * 1024), 64 * 1024 * 1024))

    def build(resident_mode):
        def const_spec(shape):
            if resident_mode is None:
                return pl.BlockSpec(shape, lambda i: (0, 0))
            return pl.BlockSpec(shape, lambda i: (0, 0), pipeline_mode=resident_mode)

        return pl.pallas_call(
            mlp_kernel,
            out_shape=jax.ShapeDtypeStruct((Mp, Cp), out_dtype),
            grid_spec=pltpu.PrefetchScalarGridSpec(
                num_scalar_prefetch=0,
                grid=(Mp // tm,),
                in_specs=[
                    pl.BlockSpec((tm, Cp), lambda i: (i, 0)),   # x row tile
                    const_spec((Cp, Hp)),                       # W1 (resident)
                    const_spec((1, Hp)),                        # b1
                    const_spec((Hp, Cp)),                       # W2 (resident)
                    const_spec((1, Cp)),                        # b2
                ],
                out_specs=pl.BlockSpec((tm, Cp), lambda i: (i, 0)),
            ),
            compiler_params=pltpu.CompilerParams(
                dimension_semantics=("parallel",),
                vmem_limit_bytes=vmem_limit),
        )

    try:
        # Constant-index weight blocks: single-buffered (skip the pointless 2x copy).
        out2d = jax.block_until_ready(build(pl.Buffered(1))(x2d, w1p, b1p, w2p, b2p))
    except Exception:
        # Fallback to default double-buffering if single-buffering is rejected.
        out2d = build(None)(x2d, w1p, b1p, w2p, b2p)

    return out2d[:M, :C].reshape(B, T, C)


def mlp_reference(x, w1, b1, w2, b2):
    h = jnp.einsum("btc,ch->bth", x, w1) + b1
    c = jnp.float32(0.7978845608028654)
    g = 0.5 * h * (1.0 + jnp.tanh(c * (h + 0.044715 * h ** 3)))
    return jnp.einsum("bth,hc->btc", g, w2) + b2


if __name__ == "__main__":
    # Small config: B=2, T=8, n_embd=32, hidden=4*n_embd=128.
    B, T, C = 2, 8, 32
    H = 4 * C

    key = jax.random.PRNGKey(0)
    kx, k1, k2, k3, k4 = jax.random.split(key, 5)

    # Deterministic parameter init (PyTorch-Linear-like uniform scale).
    x = jax.random.normal(kx, (B, T, C), dtype=jnp.float32)
    lim1 = 1.0 / (C ** 0.5)
    lim2 = 1.0 / (H ** 0.5)
    w1 = jax.random.uniform(k1, (C, H), jnp.float32, -lim1, lim1)   # c_fc.weight.T
    b1 = jax.random.uniform(k2, (H,), jnp.float32, -lim1, lim1)     # c_fc.bias
    w2 = jax.random.uniform(k3, (H, C), jnp.float32, -lim2, lim2)   # c_proj.weight.T
    b2 = jax.random.uniform(k4, (C,), jnp.float32, -lim2, lim2)     # c_proj.bias

    # f32 path: exact check against the reference.
    out = mlp_pallas(x, w1, b1, w2, b2)
    out = jax.block_until_ready(out)
    ref = mlp_reference(x, w1, b1, w2, b2)
    assert out.shape == (B, T, C)
    assert jnp.allclose(out, ref, atol=1e-5, rtol=1e-5), "mismatch vs reference"

    # bf16 MXU path smoke test (native bf16 inputs, f32 accumulation).
    out_bf16 = mlp_pallas(x.astype(jnp.bfloat16), w1, b1, w2, b2,
                          compute_dtype=jnp.bfloat16)
    out_bf16 = jax.block_until_ready(out_bf16)
    assert out_bf16.shape == (B, T, C)
    assert bool(jnp.all(jnp.isfinite(out_bf16.astype(jnp.float32))))

    print("KERNEL_OK")
</pallas_src>

<mosaic_0001>
module attributes {stable_mosaic.version = 11 : i64} {
  func.func @mlp_kernel(%arg0: i32, %arg1: memref<16x128xf32, #tpu.memory_space<vmem>>, %arg2: memref<128x128xf32, #tpu.memory_space<vmem>>, %arg3: memref<1x128xf32, #tpu.memory_space<vmem>>, %arg4: memref<128x128xf32, #tpu.memory_space<vmem>>, %arg5: memref<1x128xf32, #tpu.memory_space<vmem>>, %arg6: memref<16x128xf32, #tpu.memory_space<vmem>>) attributes {dimension_semantics = [#tpu.dimension_semantics<parallel>], iteration_bounds = array<i64: 1>, scalar_prefetch = 0 : i64, scratch_operands = 0 : i64, tpu.core_type = #tpu.core_type<tc>, window_params = [{transform_indices = @transform_0, window_bounds = array<i64: 16, 128>}, {pipeline_mode = #tpu.pipeline_mode<synchronous>, transform_indices = @transform_1, window_bounds = array<i64: 128, 128>}, {pipeline_mode = #tpu.pipeline_mode<synchronous>, transform_indices = @transform_2, window_bounds = array<i64: 1, 128>}, {pipeline_mode = #tpu.pipeline_mode<synchronous>, transform_indices = @transform_3, window_bounds = array<i64: 128, 128>}, {pipeline_mode = #tpu.pipeline_mode<synchronous>, transform_indices = @transform_4, window_bounds = array<i64: 1, 128>}, {transform_indices = @transform_5, window_bounds = array<i64: 16, 128>}]} {
    %c0 = arith.constant 0 : index
    %c0_0 = arith.constant 0 : index
    %0 = vector.load %arg3[%c0, %c0_0] : memref<1x128xf32, #tpu.memory_space<vmem>>, vector<1x128xf32>
    %c0_1 = arith.constant 0 : index
    %c0_2 = arith.constant 0 : index
    %1 = vector.load %arg5[%c0_1, %c0_2] : memref<1x128xf32, #tpu.memory_space<vmem>>, vector<1x128xf32>
    %c0_3 = arith.constant 0 : index
    %c0_4 = arith.constant 0 : index
    %2 = vector.load %arg1[%c0_3, %c0_4] : memref<16x128xf32, #tpu.memory_space<vmem>>, vector<16x128xf32>
    %c0_5 = arith.constant 0 : index
    %c0_6 = arith.constant 0 : index
    %3 = vector.load %arg2[%c0_5, %c0_6] : memref<128x128xf32, #tpu.memory_space<vmem>>, vector<128x128xf32>
    %cst = arith.constant dense<0.000000e+00> : vector<16x128xf32>
    %4 = tpu.matmul %2, %3, %cst {dimension_numbers = #tpu.dot_dimension_numbers<[1], [0], [0], [1], [0, 0, 1, 1], [], []>} : vector<16x128xf32>, vector<128x128xf32>, vector<16x128xf32> -> vector<16x128xf32>
    %5 = vector.broadcast %0 : vector<1x128xf32> to vector<16x128xf32>
    %6 = arith.addf %4, %5 : vector<16x128xf32>
    %7 = arith.mulf %6, %6 : vector<16x128xf32>
    %cst_7 = arith.constant 5.000000e-01 : f32
    %8 = vector.broadcast %cst_7 : f32 to vector<16x128xf32>
    %9 = arith.mulf %8, %6 : vector<16x128xf32>
    %cst_8 = arith.constant 4.471500e-02 : f32
    %10 = vector.broadcast %cst_8 : f32 to vector<16x128xf32>
    %11 = arith.mulf %10, %7 : vector<16x128xf32>
    %12 = arith.mulf %11, %6 : vector<16x128xf32>
    %13 = arith.addf %6, %12 : vector<16x128xf32>
    %cst_9 = arith.constant 0.797884583 : f32
    %14 = vector.broadcast %cst_9 : f32 to vector<16x128xf32>
    %15 = arith.mulf %14, %13 : vector<16x128xf32>
    %16 = math.tanh %15 : vector<16x128xf32>
    %cst_10 = arith.constant 1.000000e+00 : f32
    %17 = vector.broadcast %cst_10 : f32 to vector<16x128xf32>
    %18 = arith.addf %17, %16 : vector<16x128xf32>
    %19 = arith.mulf %9, %18 : vector<16x128xf32>
    %c0_11 = arith.constant 0 : index
    %c0_12 = arith.constant 0 : index
    %20 = vector.load %arg4[%c0_11, %c0_12] : memref<128x128xf32, #tpu.memory_space<vmem>>, vector<128x128xf32>
    %cst_13 = arith.constant dense<0.000000e+00> : vector<16x128xf32>
    %21 = tpu.matmul %19, %20, %cst_13 {dimension_numbers = #tpu.dot_dimension_numbers<[1], [0], [0], [1], [0, 0, 1, 1], [], []>} : vector<16x128xf32>, vector<128x128xf32>, vector<16x128xf32> -> vector<16x128xf32>
    %22 = vector.broadcast %1 : vector<1x128xf32> to vector<16x128xf32>
    %23 = arith.addf %21, %22 : vector<16x128xf32>
    %c0_14 = arith.constant 0 : index
    %c0_15 = arith.constant 0 : index
    %24 = vector.load %arg6[%c0_14, %c0_15] : memref<16x128xf32, #tpu.memory_space<vmem>>, vector<16x128xf32>
    tpu.vector_store %arg6[%c0_14, %c0_15], %23 {strides = array<i32>} : memref<16x128xf32, #tpu.memory_space<vmem>>, vector<16x128xf32>,
    return
  }
  func.func @transform_0(%arg0: i32) -> (i32, i32) {
    %c0_i32 = arith.constant 0 : i32
    %c0_i32_0 = arith.constant 0 : i32
    return %arg0, %c0_i32 : i32, i32
  }
  func.func @transform_1(%arg0: i32) -> (i32, i32) {
    %c0_i32 = arith.constant 0 : i32
    %c0_i32_0 = arith.constant 0 : i32
    %c0_i32_1 = arith.constant 0 : i32
    return %c0_i32, %c0_i32_0 : i32, i32
  }
  func.func @transform_2(%arg0: i32) -> (i32, i32) {
    %c0_i32 = arith.constant 0 : i32
    %c0_i32_0 = arith.constant 0 : i32
    %c0_i32_1 = arith.constant 0 : i32
    return %c0_i32, %c0_i32_0 : i32, i32
  }
  func.func @transform_3(%arg0: i32) -> (i32, i32) {
    %c0_i32 = arith.constant 0 : i32
    %c0_i32_0 = arith.constant 0 : i32
    %c0_i32_1 = arith.constant 0 : i32
    return %c0_i32, %c0_i32_0 : i32, i32
  }
  func.func @transform_4(%arg0: i32) -> (i32, i32) {
    %c0_i32 = arith.constant 0 : i32
    %c0_i32_0 = arith.constant 0 : i32
    %c0_i32_1 = arith.constant 0 : i32
    return %c0_i32, %c0_i32_0 : i32, i32
  }
  func.func @transform_5(%arg0: i32) -> (i32, i32) {
    %c0_i32 = arith.constant 0 : i32
    %c0_i32_0 = arith.constant 0 : i32
    return %arg0, %c0_i32 : i32, i32
  }
}

module attributes {stable_mosaic.version = 11 : i64} {
  func.func @mlp_kernel(%arg0: i32, %arg1: memref<16x128xf32, #tpu.memory_space<vmem>>, %arg2: memref<128x128xf32, #tpu.memory_space<vmem>>, %arg3: memref<1x128xf32, #tpu.memory_space<vmem>>, %arg4: memref<128x128xf32, #tpu.memory_space<vmem>>, %arg5: memref<1x128xf32, #tpu.memory_space<vmem>>, %arg6: memref<16x128xf32, #tpu.memory_space<vmem>>) attributes {dimension_semantics = [#tpu.dimension_semantics<parallel>], iteration_bounds = array<i64: 1>, scalar_prefetch = 0 : i64, scratch_operands = 0 : i64, tpu.core_type = #tpu.core_type<tc>, window_params = [{transform_indices = @transform_0, window_bounds = array<i64: 16, 128>}, {pipeline_mode = #tpu.pipeline_mode<synchronous>, transform_indices = @transform_1, window_bounds = array<i64: 128, 128>}, {pipeline_mode = #tpu.pipeline_mode<synchronous>, transform_indices = @transform_2, window_bounds = array<i64: 1, 128>}, {pipeline_mode = #tpu.pipeline_mode<synchronous>, transform_indices = @transform_3, window_bounds = array<i64: 128, 128>}, {pipeline_mode = #tpu.pipeline_mode<synchronous>, transform_indices = @transform_4, window_bounds = array<i64: 1, 128>}, {transform_indices = @transform_5, window_bounds = array<i64: 16, 128>}]} {
    %c0 = arith.constant 0 : index
    %c0_0 = arith.constant 0 : index
    %0 = vector.load %arg3[%c0, %c0_0] : memref<1x128xf32, #tpu.memory_space<vmem>>, vector<1x128xf32>
    %c0_1 = arith.constant 0 : index
    %c0_2 = arith.constant 0 : index
    %1 = vector.load %arg5[%c0_1, %c0_2] : memref<1x128xf32, #tpu.memory_space<vmem>>, vector<1x128xf32>
    %c0_3 = arith.constant 0 : index
    %c0_4 = arith.constant 0 : index
    %2 = vector.load %arg1[%c0_3, %c0_4] : memref<16x128xf32, #tpu.memory_space<vmem>>, vector<16x128xf32>
    %c0_5 = arith.constant 0 : index
    %c0_6 = arith.constant 0 : index
    %3 = vector.load %arg2[%c0_5, %c0_6] : memref<128x128xf32, #tpu.memory_space<vmem>>, vector<128x128xf32>
    %cst = arith.constant dense<0.000000e+00> : vector<16x128xf32>
    %4 = tpu.matmul %2, %3, %cst {dimension_numbers = #tpu.dot_dimension_numbers<[1], [0], [0], [1], [0, 0, 1, 1], [], []>} : vector<16x128xf32>, vector<128x128xf32>, vector<16x128xf32> -> vector<16x128xf32>
    %5 = vector.broadcast %0 : vector<1x128xf32> to vector<16x128xf32>
    %6 = arith.addf %4, %5 : vector<16x128xf32>
    %7 = arith.mulf %6, %6 : vector<16x128xf32>
    %cst_7 = arith.constant 5.000000e-01 : f32
    %8 = vector.broadcast %cst_7 : f32 to vector<16x128xf32>
    %9 = arith.mulf %8, %6 : vector<16x128xf32>
    %cst_8 = arith.constant 4.471500e-02 : f32
    %10 = vector.broadcast %cst_8 : f32 to vector<16x128xf32>
    %11 = arith.mulf %10, %7 : vector<16x128xf32>
    %12 = arith.mulf %11, %6 : vector<16x128xf32>
    %13 = arith.addf %6, %12 : vector<16x128xf32>
    %cst_9 = arith.constant 0.797884583 : f32
    %14 = vector.broadcast %cst_9 : f32 to vector<16x128xf32>
    %15 = arith.mulf %14, %13 : vector<16x128xf32>
    %16 = math.tanh %15 : vector<16x128xf32>
    %cst_10 = arith.constant 1.000000e+00 : f32
    %17 = vector.broadcast %cst_10 : f32 to vector<16x128xf32>
    %18 = arith.addf %17, %16 : vector<16x128xf32>
    %19 = arith.mulf %9, %18 : vector<16x128xf32>
    %c0_11 = arith.constant 0 : index
    %c0_12 = arith.constant 0 : index
    %20 = vector.load %arg4[%c0_11, %c0_12] : memref<128x128xf32, #tpu.memory_space<vmem>>, vector<128x128xf32>
    %cst_13 = arith.constant dense<0.000000e+00> : vector<16x128xf32>
    %21 = tpu.matmul %19, %20, %cst_13 {dimension_numbers = #tpu.dot_dimension_numbers<[1], [0], [0], [1], [0, 0, 1, 1], [], []>} : vector<16x128xf32>, vector<128x128xf32>, vector<16x128xf32> -> vector<16x128xf32>
    %22 = vector.broadcast %1 : vector<1x128xf32> to vector<16x128xf32>
    %23 = arith.addf %21, %22 : vector<16x128xf32>
    %c0_14 = arith.constant 0 : index
    %c0_15 = arith.constant 0 : index
    %24 = vector.load %arg6[%c0_14, %c0_15] : memref<16x128xf32, #tpu.memory_space<vmem>>, vector<16x128xf32>
    tpu.vector_store %arg6[%c0_14, %c0_15], %23 {strides = array<i32>} : memref<16x128xf32, #tpu.memory_space<vmem>>, vector<16x128xf32>,
    return
  }
  func.func @transform_0(%arg0: i32) -> (i32, i32) {
    %c0_i32 = arith.constant 0 : i32
    %c0_i32_0 = arith.constant 0 : i32
    return %arg0, %c0_i32 : i32, i32
  }
  func.func @transform_1(%arg0: i32) -> (i32, i32) {
    %c0_i32 = arith.constant 0 : i32
    %c0_i32_0 = arith.constant 0 : i32
    %c0_i32_1 = arith.constant 0 : i32
    return %c0_i32, %c0_i32_0 : i32, i32
  }
  func.func @transform_2(%arg0: i32) -> (i32, i32) {
    %c0_i32 = arith.constant 0 : i32
    %c0_i32_0 = arith.constant 0 : i32
    %c0_i32_1 = arith.constant 0 : i32
    return %c0_i32, %c0_i32_0 : i32, i32
  }
  func.func @transform_3(%arg0: i32) -> (i32, i32) {
    %c0_i32 = arith.constant 0 : i32
    %c0_i32_0 = arith.constant 0 : i32
    %c0_i32_1 = arith.constant 0 : i32
    return %c0_i32, %c0_i32_0 : i32, i32
  }
  func.func @transform_4(%arg0: i32) -> (i32, i32) {
    %c0_i32 = arith.constant 0 : i32
    %c0_i32_0 = arith.constant 0 : i32
    %c0_i32_1 = arith.constant 0 : i32
    return %c0_i32, %c0_i32_0 : i32, i32
  }
  func.func @transform_5(%arg0: i32) -> (i32, i32) {
    %c0_i32 = arith.constant 0 : i32
    %c0_i32_0 = arith.constant 0 : i32
    return %arg0, %c0_i32 : i32, i32
  }
}

</mosaic_0001>

<bundles_post_ra>
// kernel: tpu_custom_call.1
= control target key start
LH: loop header
LB: loop body
LE: loop exit
PB: predicated region body
PF: predicated region fallthrough
CT: control target
= control target key end

     0   :  { %10 = vsyncpa [#allocation3], 0  ;;  %s568_s0 = inlined_call_operand.hbm [shape: f32[16,128], index: 0, kind: input, shape index: {}]   ;;  %s569_s1 = inlined_call_operand.hbm [shape: f32[128,128], index: 1, kind: input, shape index: {}]   ;;  %s570_s2 = inlined_call_operand.vmem [shape: f32[1,128], index: 2, kind: input, shape index: {}]   ;;  %s571_s3 = inlined_call_operand.hbm [shape: f32[128,128], index: 3, kind: input, shape index: {}]   ;;  %s572_s4 = inlined_call_operand.vmem [shape: f32[1,128], index: 4, kind: input, shape index: {}]   ;;  %s573_s5 = inlined_call_operand.hbm [shape: f32[16,128], index: 5, kind: output, shape index: {}]  }
   0x1   :  { %11 = vsyncpa [#allocation6], 0 }
   0x2   :  { %12 = vsyncpa [#allocation4], 0  ;;  %s502_s18 = smov [#allocation5]   ;;  %s503_s20 = smov [#allocation2]  }
   0x3   :  { %s30_s19 = sshll.u32 %s502_s18, 4  ;;  %s18_s21 = sshll.u32 %s503_s20, 4  ;;  %s31_s19 = int_to_ptr.vmem [resolvable:$true] %s30_s19  ;;  %s19_s21 = int_to_ptr.vmem [resolvable:$true] %s18_s21 }
   0x4   :  { %s424_s22 = scalar_lea.vmem %s31_s19, 2048  ;;  %p429_p1 = scmp.lt.s32.totalorder %s31_s19, %s31_s19 }
   0x5   :  { %p425_p0 = scmp.ne.s32.totalorder %s31_s19, %s424_s22  ;;  %p430_p2 = scmp.lt.s32.totalorder %s424_s22, %s424_s22 }
   0x7   :  { %p431_p3 = por %p430_p2, %p429_p1 }
   0x9   :  { %p432_p4 = pnand %p431_p3, %p425_p0 }
   0xb   :  { %435 = shalt.err (!%p432_p4)
}
   0xc   :  { %s504_s23 = smov 128   ;;  %s505_s24 = smov 8  }
   0xd   :  { %36 = dma.hbm_to_vmem [thread:$0]  %s569_s1, 2048, %s31_s19, [#allocation6], %s504_s23, %s504_s23, %s505_s24  }
   0xe   :  { %s444_s27 = scalar_lea.vmem %s19_s21, 256  ;;  %p449_p6 = scmp.lt.s32.totalorder %s19_s21, %s19_s21 }
   0xf   :  { %p445_p5 = scmp.ne.s32.totalorder %s19_s21, %s444_s27  ;;  %p450_p7 = scmp.lt.s32.totalorder %s444_s27, %s444_s27 }
  0x11   :  { %p451_p8 = por %p450_p7, %p449_p6 }
  0x13   :  { %p452_p9 = pnand %p451_p8, %p445_p5 }
  0x15   :  { %455 = shalt.err (!%p452_p9)
}
  0x16   :  { %24 = dma.hbm_to_vmem [thread:$0]  %s568_s0, 256, %s19_s21, [#allocation3], %s504_s23, %s504_s23, %s505_s24  }
  0x17   :  { %s506_s30 = smov [#allocation7]  }
  0x18   :  { %s44_s6 = sshll.u32 %s506_s30, 4  ;;  %s45_s6 = int_to_ptr.vmem [resolvable:$true] %s44_s6 }
  0x19   :  { %s464_s7 = scalar_lea.vmem %s45_s6, 2048  ;;  %p469_p11 = scmp.lt.s32.totalorder %s45_s6, %s45_s6 }
  0x1a   :  { %p465_p10 = scmp.ne.s32.totalorder %s45_s6, %s464_s7  ;;  %p470_p12 = scmp.lt.s32.totalorder %s464_s7, %s464_s7 }
  0x1c   :  { %p471_p13 = por %p470_p12, %p469_p11 }
  0x1e   :  { %p472_p0 = pnand %p471_p13, %p465_p10 }
  0x20   :  { %475 = shalt.err (!%p472_p0)
}
  0x21   :  { %50 = dma.hbm_to_vmem [thread:$0]  %s571_s3, 2048, %s45_s6, [#allocation6], %s504_s23, %s504_s23, %s505_s24  }
  0x22   :  { %496 = dma.done.wait [#allocation3], 256  }
  0x23   :  { %497 = vsyncadd [#allocation3], 4294967040 }
  0x24   :  { %498 = dma.done.wait [#allocation6], 4096  }
  0x25   :  { %499 = vsyncadd [#allocation6], 4294963200  ;;  %v81_v0 = vld [vmem:[#allocation5 + $0x78] sm:$0xff]  ;;  %v80_v1 = vld [vmem:[#allocation5 + $0x70] sm:$0xff]  ;;  %s507_s10 = smov [#allocation8]  }
  0x26   :  { %336 = vmatprep.subr.mxu0 %v81_v0  ;;  %v79_v2 = vld [vmem:[#allocation5 + $0x68] sm:$0xff]  ;;  %v78_v3 = vld [vmem:[#allocation5 + $0x60] sm:$0xff]  ;;  %v64_v4 = vld [vmem:[#allocation2] sm:$0xff]  ;;  %s285_s11 = sshll.u32 %s507_s10, 4  ;;  %s286_s11 = int_to_ptr.vmem [resolvable:$true] %s285_s11 }
  0x27   :  { %337 = vmatpush3.msra.mxu0 %v81_v0  ;;  %v77_v5 = vld [vmem:[#allocation5 + $0x58] sm:$0xff]  ;;  %368 = vmatprep.mubr.f32.mxu0 %v64_v4  ;;  %v76_v6 = vld [vmem:[#allocation5 + $0x50] sm:$0xff]  ;;  %v75_v7 = vld [vmem:[#allocation5 + $0x48] sm:$0xff]  ;;  %s476_s12 = scalar_lea.vmem %s286_s11, 256  ;;  %p481_p2 = scmp.lt.s32.totalorder %s286_s11, %s286_s11 }
  0x28   :  { %338 = vmatprep.subr.mxu0 %v80_v1  ;;  %v74_v8 = vld [vmem:[#allocation5 + $0x40] sm:$0xff]  ;;  %v73_v9 = vld [vmem:[#allocation5 + $0x38] sm:$0xff]  ;;  %v72_v10 = vld [vmem:[#allocation5 + $0x30] sm:$0xff]  ;;  %p477_p1 = scmp.ne.s32.totalorder %s286_s11, %s476_s12  ;;  %p482_p3 = scmp.lt.s32.totalorder %s476_s12, %s476_s12 }
  0x29   :  { %339 = vmatpush3.msra.mxu0 %v80_v1  ;;  %v71_v11 = vld [vmem:[#allocation5 + $0x28] sm:$0xff]  ;;  %v70_v12 = vld [vmem:[#allocation5 + $0x20] sm:$0xff]  ;;  %v69_v13 = vld [vmem:[#allocation5 + $0x18] sm:$0xff] }
  0x2a   :  { %340 = vmatprep.subr.mxu0 %v79_v2  ;;  %v68_v14 = vld [vmem:[#allocation5 + $0x10] sm:$0xff]  ;;  %v67_v15 = vld [vmem:[#allocation5 + $0x8] sm:$0xff]  ;;  %v66_v16 = vld [vmem:[#allocation5] sm:$0xff]  ;;  %p483_p4 = por %p482_p3, %p481_p2 }
  0x2b   :  { %341 = vmatpush3.msra.mxu0 %v79_v2  ;;  %v65_v17 = vld [vmem:[#allocation2 + $0x8] sm:$0xff]  ;;  %v195_v19 = vld [vmem:[#allocation7 + $0x70] sm:$0xff]  ;;  %v194_v20 = vld [vmem:[#allocation7 + $0x68] sm:$0xff] }
  0x2c   :  { %342 = vmatprep.subr.mxu0 %v78_v3  ;;  %v196_v18 = vld [vmem:[#allocation7 + $0x78] sm:$0xff]  ;;  %v193_v21 = vld [vmem:[#allocation7 + $0x60] sm:$0xff]  ;;  %v191_v23 = vld [vmem:[#allocation7 + $0x50] sm:$0xff]  ;;  %p484_p5 = pnand %p483_p4, %p477_p1 }
  0x2d   :  { %343 = vmatpush3.msra.mxu0 %v78_v3  ;;  %371 = vmatprep.subr.mxu1 %v196_v18  ;;  %v192_v22 = vld [vmem:[#allocation7 + $0x58] sm:$0xff]  ;;  %v190_v24 = vld [vmem:[#allocation7 + $0x48] sm:$0xff]  ;;  %v189_v25 = vld [vmem:[#allocation7 + $0x40] sm:$0xff] }
  0x2e   :  { %344 = vmatprep.subr.mxu0 %v77_v5  ;;  %372 = vmatpush3.msra.mxu1 %v196_v18  ;;  %v188_v26 = vld [vmem:[#allocation7 + $0x38] sm:$0xff]  ;;  %v187_v27 = vld [vmem:[#allocation7 + $0x30] sm:$0xff]  ;;  %v186_v28 = vld [vmem:[#allocation7 + $0x28] sm:$0xff] }
  0x2f   :  { %345 = vmatpush3.msra.mxu0 %v77_v5  ;;  %373 = vmatprep.subr.mxu1 %v195_v19  ;;  %v185_v29 = vld [vmem:[#allocation7 + $0x20] sm:$0xff]  ;;  %v184_v30 = vld [vmem:[#allocation7 + $0x18] sm:$0xff]  ;;  %v183_v31 = vld [vmem:[#allocation7 + $0x10] sm:$0xff] }
  0x30   :  { %346 = vmatprep.subr.mxu0 %v76_v6  ;;  %374 = vmatpush3.msra.mxu1 %v195_v19  ;;  %v182_v32 = vld [vmem:[#allocation7 + $0x8] sm:$0xff]  ;;  %v181_v33 = vld [vmem:[#allocation7] sm:$0xff]  ;;  %v298_v34 = vld [vmem:[%s570_s2] ss:$0 sm:$0xff] }
  0x31   :  { %347 = vmatpush3.msra.mxu0 %v76_v6  ;;  %375 = vmatprep.subr.mxu1 %v194_v20  ;;  %v299_v57 = vld [vmem:[%s572_s4] ss:$0 sm:$0xff] }
  0x32   :  { %348 = vmatprep.subr.mxu0 %v75_v7  ;;  %376 = vmatpush3.msra.mxu1 %v194_v20 }
  0x33   :  { %349 = vmatpush3.msra.mxu0 %v75_v7  ;;  %377 = vmatprep.subr.mxu1 %v193_v21 }
  0x34   :  { %350 = vmatprep.subr.mxu0 %v74_v8  ;;  %378 = vmatpush3.msra.mxu1 %v193_v21 }
  0x35   :  { %351 = vmatpush3.msra.mxu0 %v74_v8  ;;  %379 = vmatprep.subr.mxu1 %v192_v22 }
  0x36   :  { %352 = vmatprep.subr.mxu0 %v73_v9  ;;  %380 = vmatpush3.msra.mxu1 %v192_v22 }
  0x37   :  { %353 = vmatpush3.msra.mxu0 %v73_v9  ;;  %381 = vmatprep.subr.mxu1 %v191_v23 }
  0x38   :  { %354 = vmatprep.subr.mxu0 %v72_v10  ;;  %382 = vmatpush3.msra.mxu1 %v191_v23 }
  0x39   :  { %355 = vmatpush3.msra.mxu0 %v72_v10  ;;  %383 = vmatprep.subr.mxu1 %v190_v24 }
  0x3a   :  { %356 = vmatprep.subr.mxu0 %v71_v11  ;;  %384 = vmatpush3.msra.mxu1 %v190_v24 }
  0x3b   :  { %357 = vmatpush3.msra.mxu0 %v71_v11  ;;  %385 = vmatprep.subr.mxu1 %v189_v25 }
  0x3c   :  { %358 = vmatprep.subr.mxu0 %v70_v12  ;;  %386 = vmatpush3.msra.mxu1 %v189_v25 }
  0x3d   :  { %359 = vmatpush3.msra.mxu0 %v70_v12  ;;  %387 = vmatprep.subr.mxu1 %v188_v26 }
  0x3e   :  { %360 = vmatprep.subr.mxu0 %v69_v13  ;;  %388 = vmatpush3.msra.mxu1 %v188_v26 }
  0x3f   :  { %361 = vmatpush3.msra.mxu0 %v69_v13  ;;  %389 = vmatprep.subr.mxu1 %v187_v27 }
  0x40   :  { %362 = vmatprep.subr.mxu0 %v68_v14  ;;  %390 = vmatpush3.msra.mxu1 %v187_v27 }
  0x41   :  { %363 = vmatpush3.msra.mxu0 %v68_v14  ;;  %391 = vmatprep.subr.mxu1 %v186_v28 }
  0x42   :  { %364 = vmatprep.subr.mxu0 %v67_v15  ;;  %392 = vmatpush3.msra.mxu1 %v186_v28 }
  0x43   :  { %365 = vmatpush3.msra.mxu0 %v67_v15  ;;  %393 = vmatprep.subr.mxu1 %v185_v29 }
  0x44   :  { %366 = vmatprep.subr.mxu0 %v66_v16  ;;  %394 = vmatpush3.msra.mxu1 %v185_v29 }
  0x45   :  { %367 = vmatpush3.msra.mxu0 %v66_v16  ;;  %395 = vmatprep.subr.mxu1 %v184_v30 }
  0x46   :  { %369 = vmatmul.mubr.f32.vlgmr.msra.gmra.mxu0 %v65_v17  ;;  %396 = vmatpush3.msra.mxu1 %v184_v30 }
  0x47   :  { %397 = vmatprep.subr.mxu1 %v183_v31 }
  0x48   :  { %398 = vmatpush3.msra.mxu1 %v183_v31 }
  0x49   :  { %399 = vmatprep.subr.mxu1 %v182_v32 }
  0x4a   :  { %400 = vmatpush3.msra.mxu1 %v182_v32 }
  0x4b   :  { %401 = vmatprep.subr.mxu1 %v181_v33 }
  0x4c   :  { %402 = vmatpush3.msra.mxu1 %v181_v33 }
 0x106   :  { %v370_v35 = vpop.f32.mrf.mxu0 }
 0x107   :  { %v160_v36 = vadd.f32 %v370_v35, %v298_v34 }
 0x108   :  { %v154_v37 = vpop.f32.mrf.mxu0 }
 0x109   :  { %v164_v38 = vmul.f32 %v160_v36, %v160_v36  ;;  %v155_v39 = vadd.f32 %v298_v34, %v154_v37  ;;  %v166_v54 = vmul.f32 0.5, %v160_v36 }
 0x10b   :  { %v168_v40 = vmul.f32 0.044715, %v164_v38  ;;  %v163_v41 = vmul.f32 %v155_v39, %v155_v39  ;;  %v165_v52 = vmul.f32 0.5, %v155_v39 }
 0x10d   :  { %v170_v42 = vmul.f32 %v168_v40, %v160_v36  ;;  %v167_v43 = vmul.f32 0.044715, %v163_v41 }
 0x10f   :  { %v172_v44 = vadd.f32 %v170_v42, %v160_v36  ;;  %v169_v45 = vmul.f32 %v167_v43, %v155_v39 }
 0x111   :  { %v174_v46 = vmul.f32 0.7978846, %v172_v44  ;;  %v171_v47 = vadd.f32 %v169_v45, %v155_v39 }
 0x113   :  { %v173_v48 = vmul.f32 0.7978846, %v171_v47  ;;  %412 = vtanh.f32 %v174_v46 }
 0x115   :  { %414 = vtanh.f32 %v173_v48 }
 0x120   :  { %v413_v49 = vpop.eup %412 }
 0x121   :  { %v178_v51 = vadd.f32 1.0, %v413_v49 }
 0x122   :  { %v415_v50 = vpop.eup %414 }
 0x123   :  { %v177_v53 = vadd.f32 1.0, %v415_v50  ;;  %v180_v56 = vmul.f32 %v178_v51, %v166_v54 }
 0x125   :  { %v179_v55 = vmul.f32 %v177_v53, %v165_v52 }
 0x127   :  { %403 = vmatprep.mubr.f32.mxu1 %v179_v55 }
 0x128   :  { %404 = vmatmul.mubr.f32.vlgmr.msra.gmra.mxu1 %v180_v56 }
 0x1e8   :  { %v405_v58 = vpop.f32.mrf.mxu1 }
 0x1e9   :  { %v275_v59 = vadd.f32 %v405_v58, %v299_v57 }
 0x1ea   :  { %v269_v60 = vpop.f32.mrf.mxu1 }
 0x1eb   :  { %279 = vst [vmem:[#allocation8 + $0x8] sm:$0xff] %v275_v59  ;;  %v270_v61 = vadd.f32 %v299_v57, %v269_v60 }
 0x1ed   :  { %278 = vst [vmem:[#allocation8] sm:$0xff] %v270_v61 }
 0x1ee   :  { %487 = shalt.err (!%p484_p5)
}
 0x1ef   :  { %291 = dma.vmem_to_hbm [thread:$0]  %s286_s11, 256, %s573_s5, [#allocation4], %s504_s23, %s504_s23, %s505_s24  }
 0x1f0   :  { %500 = dma.done.wait [#allocation4], 256  }
 0x1f1   :  { %501 = vsyncadd [#allocation4], 4294967040 }
 0x1f2   :  { %295 = vsyncpa [#allocation3], 1 }
 0x1f3   :  { %296 = vsyncpa [#allocation6], 1 }
 0x1f4   :  { %297 = vsyncpa [#allocation4], 1 }

// kernel: tpu_custom_call.1
= control target key start
LH: loop header
LB: loop body
LE: loop exit
PB: predicated region body
PF: predicated region fallthrough
CT: control target
= control target key end

     0   :  { %10 = vsyncpa [#allocation3], 0  ;;  %s568_s0 = inlined_call_operand.hbm [shape: f32[16,128], index: 0, kind: input, shape index: {}]   ;;  %s569_s1 = inlined_call_operand.hbm [shape: f32[128,128], index: 1, kind: input, shape index: {}]   ;;  %s570_s2 = inlined_call_operand.vmem [shape: f32[1,128], index: 2, kind: input, shape index: {}]   ;;  %s571_s3 = inlined_call_operand.hbm [shape: f32[128,128], index: 3, kind: input, shape index: {}]   ;;  %s572_s4 = inlined_call_operand.vmem [shape: f32[1,128], index: 4, kind: input, shape index: {}]   ;;  %s573_s5 = inlined_call_operand.hbm [shape: f32[16,128], index: 5, kind: output, shape index: {}]  }
   0x1   :  { %11 = vsyncpa [#allocation6], 0 }
   0x2   :  { %12 = vsyncpa [#allocation4], 0  ;;  %s502_s18 = smov [#allocation5]   ;;  %s503_s20 = smov [#allocation2]  }
   0x3   :  { %s30_s19 = sshll.u32 %s502_s18, 4  ;;  %s18_s21 = sshll.u32 %s503_s20, 4  ;;  %s31_s19 = int_to_ptr.vmem [resolvable:$true] %s30_s19  ;;  %s19_s21 = int_to_ptr.vmem [resolvable:$true] %s18_s21 }
   0x4   :  { %s424_s22 = scalar_lea.vmem %s31_s19, 2048  ;;  %p429_p1 = scmp.lt.s32.totalorder %s31_s19, %s31_s19 }
   0x5   :  { %p425_p0 = scmp.ne.s32.totalorder %s31_s19, %s424_s22  ;;  %p430_p2 = scmp.lt.s32.totalorder %s424_s22, %s424_s22 }
   0x7   :  { %p431_p3 = por %p430_p2, %p429_p1 }
   0x9   :  { %p432_p4 = pnand %p431_p3, %p425_p0 }
   0xb   :  { %435 = shalt.err (!%p432_p4)
}
   0xc   :  { %s504_s23 = smov 128   ;;  %s505_s24 = smov 8  }
   0xd   :  { %36 = dma.hbm_to_vmem [thread:$0]  %s569_s1, 2048, %s31_s19, [#allocation6], %s504_s23, %s504_s23, %s505_s24  }
   0xe   :  { %s444_s27 = scalar_lea.vmem %s19_s21, 256  ;;  %p449_p6 = scmp.lt.s32.totalorder %s19_s21, %s19_s21 }
   0xf   :  { %p445_p5 = scmp.ne.s32.totalorder %s19_s21, %s444_s27  ;;  %p450_p7 = scmp.lt.s32.totalorder %s444_s27, %s444_s27 }
  0x11   :  { %p451_p8 = por %p450_p7, %p449_p6 }
  0x13   :  { %p452_p9 = pnand %p451_p8, %p445_p5 }
  0x15   :  { %455 = shalt.err (!%p452_p9)
}
  0x16   :  { %24 = dma.hbm_to_vmem [thread:$0]  %s568_s0, 256, %s19_s21, [#allocation3], %s504_s23, %s504_s23, %s505_s24  }
  0x17   :  { %s506_s30 = smov [#allocation7]  }
  0x18   :  { %s44_s6 = sshll.u32 %s506_s30, 4  ;;  %s45_s6 = int_to_ptr.vmem [resolvable:$true] %s44_s6 }
  0x19   :  { %s464_s7 = scalar_lea.vmem %s45_s6, 2048  ;;  %p469_p11 = scmp.lt.s32.totalorder %s45_s6, %s45_s6 }
  0x1a   :  { %p465_p10 = scmp.ne.s32.totalorder %s45_s6, %s464_s7  ;;  %p470_p12 = scmp.lt.s32.totalorder %s464_s7, %s464_s7 }
  0x1c   :  { %p471_p13 = por %p470_p12, %p469_p11 }
  0x1e   :  { %p472_p0 = pnand %p471_p13, %p465_p10 }
  0x20   :  { %475 = shalt.err (!%p472_p0)
}
  0x21   :  { %50 = dma.hbm_to_vmem [thread:$0]  %s571_s3, 2048, %s45_s6, [#allocation6], %s504_s23, %s504_s23, %s505_s24  }
  0x22   :  { %496 = dma.done.wait [#allocation3], 256  }
  0x23   :  { %497 = vsyncadd [#allocation3], 4294967040 }
  0x24   :  { %498 = dma.done.wait [#allocation6], 4096  }
  0x25   :  { %499 = vsyncadd [#allocation6], 4294963200  ;;  %v81_v0 = vld [vmem:[#allocation5 + $0x78] sm:$0xff]  ;;  %v80_v1 = vld [vmem:[#allocation5 + $0x70] sm:$0xff]  ;;  %s507_s10 = smov [#allocation8]  }
  0x26   :  { %336 = vmatprep.subr.mxu0 %v81_v0  ;;  %v79_v2 = vld [vmem:[#allocation5 + $0x68] sm:$0xff]  ;;  %v78_v3 = vld [vmem:[#allocation5 + $0x60] sm:$0xff]  ;;  %v64_v4 = vld [vmem:[#allocation2] sm:$0xff]  ;;  %s285_s11 = sshll.u32 %s507_s10, 4  ;;  %s286_s11 = int_to_ptr.vmem [resolvable:$true] %s285_s11 }
  0x27   :  { %337 = vmatpush3.msra.mxu0 %v81_v0  ;;  %v77_v5 = vld [vmem:[#allocation5 + $0x58] sm:$0xff]  ;;  %368 = vmatprep.mubr.f32.mxu0 %v64_v4  ;;  %v76_v6 = vld [vmem:[#allocation5 + $0x50] sm:$0xff]  ;;  %v75_v7 = vld [vmem:[#allocation5 + $0x48] sm:$0xff]  ;;  %s476_s12 = scalar_lea.vmem %s286_s11, 256  ;;  %p481_p2 = scmp.lt.s32.totalorder %s286_s11, %s286_s11 }
  0x28   :  { %338 = vmatprep.subr.mxu0 %v80_v1  ;;  %v74_v8 = vld [vmem:[#allocation5 + $0x40] sm:$0xff]  ;;  %v73_v9 = vld [vmem:[#allocation5 + $0x38] sm:$0xff]  ;;  %v72_v10 = vld [vmem:[#allocation5 + $0x30] sm:$0xff]  ;;  %p477_p1 = scmp.ne.s32.totalorder %s286_s11, %s476_s12  ;;  %p482_p3 = scmp.lt.s32.totalorder %s476_s12, %s476_s12 }
  0x29   :  { %339 = vmatpush3.msra.mxu0 %v80_v1  ;;  %v71_v11 = vld [vmem:[#allocation5 + $0x28] sm:$0xff]  ;;  %v70_v12 = vld [vmem:[#allocation5 + $0x20] sm:$0xff]  ;;  %v69_v13 = vld [vmem:[#allocation5 + $0x18] sm:$0xff] }
  0x2a   :  { %340 = vmatprep.subr.mxu0 %v79_v2  ;;  %v68_v14 = vld [vmem:[#allocation5 + $0x10] sm:$0xff]  ;;  %v67_v15 = vld [vmem:[#allocation5 + $0x8] sm:$0xff]  ;;  %v66_v16 = vld [vmem:[#allocation5] sm:$0xff]  ;;  %p483_p4 = por %p482_p3, %p481_p2 }
  0x2b   :  { %341 = vmatpush3.msra.mxu0 %v79_v2  ;;  %v65_v17 = vld [vmem:[#allocation2 + $0x8] sm:$0xff]  ;;  %v195_v19 = vld [vmem:[#allocation7 + $0x70] sm:$0xff]  ;;  %v194_v20 = vld [vmem:[#allocation7 + $0x68] sm:$0xff] }
  0x2c   :  { %342 = vmatprep.subr.mxu0 %v78_v3  ;;  %v196_v18 = vld [vmem:[#allocation7 + $0x78] sm:$0xff]  ;;  %v193_v21 = vld [vmem:[#allocation7 + $0x60] sm:$0xff]  ;;  %v191_v23 = vld [vmem:[#allocation7 + $0x50] sm:$0xff]  ;;  %p484_p5 = pnand %p483_p4, %p477_p1 }
  0x2d   :  { %343 = vmatpush3.msra.mxu0 %v78_v3  ;;  %371 = vmatprep.subr.mxu1 %v196_v18  ;;  %v192_v22 = vld [vmem:[#allocation7 + $0x58] sm:$0xff]  ;;  %v190_v24 = vld [vmem:[#allocation7 + $0x48] sm:$0xff]  ;;  %v189_v25 = vld [vmem:[#allocation7 + $0x40] sm:$0xff] }
  0x2e   :  { %344 = vmatprep.subr.mxu0 %v77_v5  ;;  %372 = vmatpush3.msra.mxu1 %v196_v18  ;;  %v188_v26 = vld [vmem:[#allocation7 + $0x38] sm:$0xff]  ;;  %v187_v27 = vld [vmem:[#allocation7 + $0x30] sm:$0xff]  ;;  %v186_v28 = vld [vmem:[#allocation7 + $0x28] sm:$0xff] }
  0x2f   :  { %345 = vmatpush3.msra.mxu0 %v77_v5  ;;  %373 = vmatprep.subr.mxu1 %v195_v19  ;;  %v185_v29 = vld [vmem:[#allocation7 + $0x20] sm:$0xff]  ;;  %v184_v30 = vld [vmem:[#allocation7 + $0x18] sm:$0xff]  ;;  %v183_v31 = vld [vmem:[#allocation7 + $0x10] sm:$0xff] }
  0x30   :  { %346 = vmatprep.subr.mxu0 %v76_v6  ;;  %374 = vmatpush3.msra.mxu1 %v195_v19  ;;  %v182_v32 = vld [vmem:[#allocation7 + $0x8] sm:$0xff]  ;;  %v181_v33 = vld [vmem:[#allocation7] sm:$0xff]  ;;  %v298_v34 = vld [vmem:[%s570_s2] ss:$0 sm:$0xff] }
  0x31   :  { %347 = vmatpush3.msra.mxu0 %v76_v6  ;;  %375 = vmatprep.subr.mxu1 %v194_v20  ;;  %v299_v57 = vld [vmem:[%s572_s4] ss:$0 sm:$0xff] }
  0x32   :  { %348 = vmatprep.subr.mxu0 %v75_v7  ;;  %376 = vmatpush3.msra.mxu1 %v194_v20 }
  0x33   :  { %349 = vmatpush3.msra.mxu0 %v75_v7  ;;  %377 = vmatprep.subr.mxu1 %v193_v21 }
  0x34   :  { %350 = vmatprep.subr.mxu0 %v74_v8  ;;  %378 = vmatpush3.msra.mxu1 %v193_v21 }
  0x35   :  { %351 = vmatpush3.msra.mxu0 %v74_v8  ;;  %379 = vmatprep.subr.mxu1 %v192_v22 }
  0x36   :  { %352 = vmatprep.subr.mxu0 %v73_v9  ;;  %380 = vmatpush3.msra.mxu1 %v192_v22 }
  0x37   :  { %353 = vmatpush3.msra.mxu0 %v73_v9  ;;  %381 = vmatprep.subr.mxu1 %v191_v23 }
  0x38   :  { %354 = vmatprep.subr.mxu0 %v72_v10  ;;  %382 = vmatpush3.msra.mxu1 %v191_v23 }
  0x39   :  { %355 = vmatpush3.msra.mxu0 %v72_v10  ;;  %383 = vmatprep.subr.mxu1 %v190_v24 }
  0x3a   :  { %356 = vmatprep.subr.mxu0 %v71_v11  ;;  %384 = vmatpush3.msra.mxu1 %v190_v24 }
  0x3b   :  { %357 = vmatpush3.msra.mxu0 %v71_v11  ;;  %385 = vmatprep.subr.mxu1 %v189_v25 }
  0x3c   :  { %358 = vmatprep.subr.mxu0 %v70_v12  ;;  %386 = vmatpush3.msra.mxu1 %v189_v25 }
  0x3d   :  { %359 = vmatpush3.msra.mxu0 %v70_v12  ;;  %387 = vmatprep.subr.mxu1 %v188_v26 }
  0x3e   :  { %360 = vmatprep.subr.mxu0 %v69_v13  ;;  %388 = vmatpush3.msra.mxu1 %v188_v26 }
  0x3f   :  { %361 = vmatpush3.msra.mxu0 %v69_v13  ;;  %389 = vmatprep.subr.mxu1 %v187_v27 }
  0x40   :  { %362 = vmatprep.subr.mxu0 %v68_v14  ;;  %390 = vmatpush3.msra.mxu1 %v187_v27 }
  0x41   :  { %363 = vmatpush3.msra.mxu0 %v68_v14  ;;  %391 = vmatprep.subr.mxu1 %v186_v28 }
  0x42   :  { %364 = vmatprep.subr.mxu0 %v67_v15  ;;  %392 = vmatpush3.msra.mxu1 %v186_v28 }
  0x43   :  { %365 = vmatpush3.msra.mxu0 %v67_v15  ;;  %393 = vmatprep.subr.mxu1 %v185_v29 }
  0x44   :  { %366 = vmatprep.subr.mxu0 %v66_v16  ;;  %394 = vmatpush3.msra.mxu1 %v185_v29 }
  0x45   :  { %367 = vmatpush3.msra.mxu0 %v66_v16  ;;  %395 = vmatprep.subr.mxu1 %v184_v30 }
  0x46   :  { %369 = vmatmul.mubr.f32.vlgmr.msra.gmra.mxu0 %v65_v17  ;;  %396 = vmatpush3.msra.mxu1 %v184_v30 }
  0x47   :  { %397 = vmatprep.subr.mxu1 %v183_v31 }
  0x48   :  { %398 = vmatpush3.msra.mxu1 %v183_v31 }
  0x49   :  { %399 = vmatprep.subr.mxu1 %v182_v32 }
  0x4a   :  { %400 = vmatpush3.msra.mxu1 %v182_v32 }
  0x4b   :  { %401 = vmatprep.subr.mxu1 %v181_v33 }
  0x4c   :  { %402 = vmatpush3.msra.mxu1 %v181_v33 }
 0x106   :  { %v370_v35 = vpop.f32.mrf.mxu0 }
 0x107   :  { %v160_v36 = vadd.f32 %v370_v35, %v298_v34 }
 0x108   :  { %v154_v37 = vpop.f32.mrf.mxu0 }
 0x109   :  { %v164_v38 = vmul.f32 %v160_v36, %v160_v36  ;;  %v155_v39 = vadd.f32 %v298_v34, %v154_v37  ;;  %v166_v54 = vmul.f32 0.5, %v160_v36 }
 0x10b   :  { %v168_v40 = vmul.f32 0.044715, %v164_v38  ;;  %v163_v41 = vmul.f32 %v155_v39, %v155_v39  ;;  %v165_v52 = vmul.f32 0.5, %v155_v39 }
 0x10d   :  { %v170_v42 = vmul.f32 %v168_v40, %v160_v36  ;;  %v167_v43 = vmul.f32 0.044715, %v163_v41 }
 0x10f   :  { %v172_v44 = vadd.f32 %v170_v42, %v160_v36  ;;  %v169_v45 = vmul.f32 %v167_v43, %v155_v39 }
 0x111   :  { %v174_v46 = vmul.f32 0.7978846, %v172_v44  ;;  %v171_v47 = vadd.f32 %v169_v45, %v155_v39 }
 0x113   :  { %v173_v48 = vmul.f32 0.7978846, %v171_v47  ;;  %412 = vtanh.f32 %v174_v46 }
 0x115   :  { %414 = vtanh.f32 %v173_v48 }
 0x120   :  { %v413_v49 = vpop.eup %412 }
 0x121   :  { %v178_v51 = vadd.f32 1.0, %v413_v49 }
 0x122   :  { %v415_v50 = vpop.eup %414 }
 0x123   :  { %v177_v53 = vadd.f32 1.0, %v415_v50  ;;  %v180_v56 = vmul.f32 %v178_v51, %v166_v54 }
 0x125   :  { %v179_v55 = vmul.f32 %v177_v53, %v165_v52 }
 0x127   :  { %403 = vmatprep.mubr.f32.mxu1 %v179_v55 }
 0x128   :  { %404 = vmatmul.mubr.f32.vlgmr.msra.gmra.mxu1 %v180_v56 }
 0x1e8   :  { %v405_v58 = vpop.f32.mrf.mxu1 }
 0x1e9   :  { %v275_v59 = vadd.f32 %v405_v58, %v299_v57 }
 0x1ea   :  { %v269_v60 = vpop.f32.mrf.mxu1 }
 0x1eb   :  { %279 = vst [vmem:[#allocation8 + $0x8] sm:$0xff] %v275_v59  ;;  %v270_v61 = vadd.f32 %v299_v57, %v269_v60 }
 0x1ed   :  { %278 = vst [vmem:[#allocation8] sm:$0xff] %v270_v61 }
 0x1ee   :  { %487 = shalt.err (!%p484_p5)
}
 0x1ef   :  { %291 = dma.vmem_to_hbm [thread:$0]  %s286_s11, 256, %s573_s5, [#allocation4], %s504_s23, %s504_s23, %s505_s24  }
 0x1f0   :  { %500 = dma.done.wait [#allocation4], 256  }
 0x1f1   :  { %501 = vsyncadd [#allocation4], 4294967040 }
 0x1f2   :  { %295 = vsyncpa [#allocation3], 1 }
 0x1f3   :  { %296 = vsyncpa [#allocation6], 1 }
 0x1f4   :  { %297 = vsyncpa [#allocation4], 1 }

</bundles_post_ra>
